<compile_context>
chip_gen: v7x
topology: tpu7x:2x2x1
jax: 0.10.0
libtpu: 0.0.40
codegen_flags: <defaults>
</compile_context>

<pallas_src>
import functools

import numpy as np
import jax
import jax.numpy as jnp
from jax import lax
from jax.experimental import pallas as pl
from jax.experimental.pallas import tpu as pltpu

_LANE = 128
_SINGLE_SHOT_BYTES = 4 * 1024 * 1024   # slab <= 4 MiB -> one grid step, no splits
_UNROLL_PARAM_LOOP = 8                 # statically unroll the per-param loop below this


def _round_up(x, m):
    return ((x + m - 1) // m) * m


@functools.lru_cache(maxsize=None)
def _device_kind():
    try:
        return jax.devices()[0].device_kind.lower()
    except Exception:
        return ""


def _default_max_tile_rows():
    # v7x: ~3.2 TB/s HBM per TC makes small tiles per-step-overhead-bound -> 2 MiB
    # f32 tiles (4096 rows).  v5e/v6e: 1 MiB tiles (2048 rows).
    return 4096 if "v7" in _device_kind() else 2048


def _default_num_splits():
    # Two TensorCores per chip only on v7x; on 1-TC chips a "parallel" split is
    # just a serial loop plus padding rows, so keep a single split there.
    return 2 if "v7" in _device_kind() else 1


def _supports_low_precision_vpu():
    # v5e and older have no bf16 VALU -> upcast tiles to f32 there.
    k = _device_kind()
    return not any(t in k for t in ("v2", "v3", "v4", "v5"))


# ----------------------------------------------------------------------------
# Pallas kernel: segmented running abs-max over the packed parameter slab
# ----------------------------------------------------------------------------
def _maxl1_kernel(starts_ref, lengths_ref, x_ref, o_ref, *, n_params,
                  compute_dtype):
    # starts_ref:  (n_params,) int32 SMEM   first slab-row of each parameter
    # lengths_ref: (n_params,) int32 SMEM   number of slab-rows of each parameter
    # x_ref:       (tile_r, 128)            parameter slab tile (native dtype)
    # o_ref:       (p_rows, 128) f32        output-resident accumulator: row p
    #                                       holds parameter p's per-lane running
    #                                       max; lane-reduced in the last step.
    c = pl.program_id(0)                    # split (parallel axis)
    i = pl.program_id(1)                    # reduction step within the split
    tiles_per_split = pl.num_programs(1)
    tile_r = x_ref.shape[0]
    p_rows = o_ref.shape[0]

    @pl.when(i == 0)
    def _init():
        o_ref[...] = jnp.zeros_like(o_ref)          # 0 is neutral: max(|p|) >= 0

    # Hoisted work shared by all parameters of this tile.
    base = (c * tiles_per_split + i) * tile_r
    ax = jnp.abs(x_ref[...].astype(compute_dtype))                       # (tile_r, 128)
    zeros = jnp.zeros_like(ax)
    row_idx = base + lax.broadcasted_iota(jnp.int32, (tile_r, 128), 0)   # absolute rows
    acc_row = lax.broadcasted_iota(jnp.int32, (p_rows, 128), 0)

    def one_param(p, carry=0):
        start = starts_ref[p]
        length = lengths_ref[p]
        intersects = jnp.logical_and(start < base + tile_r,
                                     start + length > base)

        @pl.when(intersects)                 # only 1-3 params intersect a tile
        def _():
            # Fused range test: 0 <= row - start < length  (single unsigned cmp).
            in_seg = (row_idx - start).astype(jnp.uint32) < length.astype(jnp.uint32)
            # Sublane-first reduce: VPU tree-max over rows only; the lane reduce
            # is deferred to the per-split epilogue.
            seg_max = jnp.max(jnp.where(in_seg, ax, zeros),
                              axis=0, keepdims=True).astype(jnp.float32)  # (1, 128)
            acc = o_ref[...]
            o_ref[...] = jnp.where(acc_row == p, jnp.maximum(acc, seg_max), acc)

        return carry

    if n_params <= _UNROLL_PARAM_LOOP:
        for p in range(n_params):            # static unroll for the common case
            one_param(p)
    else:
        lax.fori_loop(0, n_params, one_param, 0)

    # Fused epilogue: one lane reduce per split (rows of unused params stay 0).
    @pl.when(i == tiles_per_split - 1)
    def _finalize():
        o_ref[...] = jnp.broadcast_to(
            jnp.max(o_ref[...], axis=1, keepdims=True), o_ref.shape)


@functools.partial(jax.jit, static_argnames=("n_params", "tile_r", "num_splits"))
def maxl1_loss_pallas(slab, starts, lengths, *, n_params, tile_r, num_splits):
    """slab: (r_pad, 128) native dtype; starts/lengths: (n_params,) int32.

    Returns scalar f32 = sum_p max(|param_p|).
    """
    r_pad, lane = slab.shape
    tiles_per_split = r_pad // (num_splits * tile_r)
    p_rows = _round_up(n_params, 8)

    # bf16/f16 math stays native on chips with a low-precision VPU (v6e/v7x);
    # upcast the tile to f32 on v5e and older (max is exact in any dtype).
    if slab.dtype == jnp.float32 or _supports_low_precision_vpu():
        compute_dtype = slab.dtype
    else:
        compute_dtype = jnp.dtype(jnp.float32)

    kernel = functools.partial(_maxl1_kernel, n_params=n_params,
                               compute_dtype=compute_dtype)

    out = pl.pallas_call(
        kernel,
        out_shape=jax.ShapeDtypeStruct((num_splits * p_rows, _LANE), jnp.float32),
        grid_spec=pltpu.PrefetchScalarGridSpec(
            num_scalar_prefetch=2,                       # starts, lengths -> SMEM
            grid=(num_splits, tiles_per_split),          # reduction axis last
            in_specs=[
                pl.BlockSpec((tile_r, lane),
                             lambda c, i, starts_s, lengths_s:
                             (c * tiles_per_split + i, 0)),
            ],
            out_specs=pl.BlockSpec((p_rows, _LANE),
                                   lambda c, i, starts_s, lengths_s: (c, 0)),
        ),
        compiler_params=pltpu.CompilerParams(
            # TODO(synk): on v7x, pltpu.CORE_PARALLEL on the split axis would
            # guarantee cross-TensorCore sharding; "parallel" is kept here for
            # portability across generations.
            dimension_semantics=("parallel", "arbitrary"),
            vmem_limit_bytes=32 * 1024 * 1024,
        ),
    )(starts, lengths, slab)

    # Tiny combine (params may span splits -> max over splits, then sum); this
    # fuses into a single small XLA op under jit.
    per_split = out[:, 0].reshape(num_splits, p_rows)
    return jnp.sum(jnp.max(per_split, axis=0))


# ----------------------------------------------------------------------------
# Parameter packing (glue): concatenate, do NOT pad to the longest parameter
# ----------------------------------------------------------------------------
def pack_params(params, num_splits=None, max_tile_rows=None,
                single_shot_bytes=None, lane=_LANE):
    """Pack params into a (r_pad, 128) slab in their native dtype.

    Each parameter is flattened and padded only to the next multiple of `lane`
    elements (zero padding is neutral for max(|.|)).  Returns
    (slab, starts, lengths, n_params, tile_r, num_splits).
    """
    if len(params) == 0:
        raise ValueError("pack_params needs at least one parameter")
    params = [jnp.asarray(p) for p in params]
    dtypes = {p.dtype for p in params}
    # TODO(synk): mixed-dtype parameter lists are upcast to one f32 slab; a
    # per-dtype slab (one pallas_call each) would avoid the extra HBM bytes.
    slab_dtype = dtypes.pop() if len(dtypes) == 1 else jnp.dtype(jnp.float32)
    itemsize = jnp.dtype(slab_dtype).itemsize
    sublane_min = {4: 8, 2: 16, 1: 32}.get(itemsize, 8)

    if max_tile_rows is None:
        max_tile_rows = _default_max_tile_rows()
    max_tile_rows = max(sublane_min, _round_up(max_tile_rows, sublane_min))
    if num_splits is None:
        num_splits = _default_num_splits()
    if single_shot_bytes is None:
        single_shot_bytes = _SINGLE_SHOT_BYTES

    row_blocks, starts, lengths = [], [], []
    r = 0
    for p in params:
        f = jnp.ravel(p).astype(slab_dtype)
        nr = max(1, -(-f.shape[0] // lane))               # rows for this param
        f = jnp.pad(f, (0, nr * lane - f.shape[0]))
        row_blocks.append(f.reshape(nr, lane))
        starts.append(r)
        lengths.append(nr)
        r += nr

    single_shot_rows = max(sublane_min, single_shot_bytes // (lane * itemsize))
    if r <= single_shot_rows:
        # Fast path: whole slab is one block / one grid step (the real Agent has
        # only a few KB of parameters -> wall time is purely dispatch-bound).
        num_splits = 1
        tile_r = _round_up(r, sublane_min)
        tiles_per_split = 1
    else:
        if r <= num_splits * max_tile_rows:   # too few tiles to benefit from splits
            num_splits = 1
        rows_per_split = -(-r // num_splits)
        tile_r = min(max_tile_rows, _round_up(rows_per_split, sublane_min))
        tiles_per_split = -(-rows_per_split // tile_r)
    r_pad = num_splits * tiles_per_split * tile_r

    slab = jnp.concatenate(row_blocks, axis=0)
    if r_pad > r:
        slab = jnp.pad(slab, ((0, r_pad - r), (0, 0)))    # pad rows match no segment

    starts_arr = jnp.asarray(np.asarray(starts, dtype=np.int32))
    lengths_arr = jnp.asarray(np.asarray(lengths, dtype=np.int32))
    return slab, starts_arr, lengths_arr, len(params), tile_r, num_splits


# ----------------------------------------------------------------------------
# Agent (JAX/Pallas re-implementation of the reference orchestration)
# ----------------------------------------------------------------------------
class AgentPallas:
    def __init__(self, agent_id="l0", obs_shape=(1, 1, 1, 16, 16),
                 vocab_size=8, max_sentence_length=5, role="speaker",
                 kwargs=None):
        self.agent_id = agent_id
        self.obs_shape = tuple(obs_shape)
        self.vocab_size = vocab_size
        self.max_sentence_length = max_sentence_length
        self.role = role
        self.kwargs = kwargs or {"with_weight_maxl1_loss": True}
        self.use_sentences_one_hot_vectors = False
        self.vocab_stop_idx = 0
        self.vocab_pad_idx = self.vocab_size

        # Deterministic synthetic parameters (what a concrete subclass would
        # register: symbol embedding, a small conv stem over obs, a head).
        key = jax.random.PRNGKey(0)
        k0, k1, k2, k3 = jax.random.split(key, 4)
        hidden = 32
        in_ch = self.obs_shape[2]
        self.params = [
            0.1 * jax.random.normal(k0, (vocab_size + 1, hidden)),    # embedding
            0.1 * jax.random.normal(k1, (4, in_ch, 3, 3)),            # conv w
            0.1 * jax.random.normal(k2, (hidden, hidden)),            # linear w
            0.1 * jax.random.normal(k3, (hidden,)),                   # linear b
        ]
        (self._slab, self._starts, self._lengths, self._n_params,
         self._tile_r, self._num_splits) = pack_params(self.params)

    # ---- hook: Pallas hot path ------------------------------------------
    def maxl1_loss_hook(self, losses_dict, input_streams_dict, outputs_dict):
        it_rep = input_streams_dict["it_rep"]
        it_comm_round = input_streams_dict["it_comm_round"]
        weight_maxl1_loss = maxl1_loss_pallas(
            self._slab, self._starts, self._lengths,
            n_params=self._n_params, tile_r=self._tile_r,
            num_splits=self._num_splits)
        outputs_dict["maxl1_loss"] = weight_maxl1_loss
        losses_dict[
            f"repetition{it_rep}/comm_round{it_comm_round}/"
            f"{self.role}_maxl1_weight_loss"
        ] = [1.0, weight_maxl1_loss]

    # ---- compute() orchestration (mirrors the reference) -----------------
    def compute(self, input_streams_dict):
        losses_dict = input_streams_dict["losses_dict"]

        input_sentence = input_streams_dict["sentences_widx"]
        if self.use_sentences_one_hot_vectors:
            input_sentence = input_streams_dict["sentences_one_hot"]

        if input_streams_dict["experiences"] is not None:
            batch_size = input_streams_dict["experiences"].shape[0]
        else:
            batch_size = input_sentence.shape[0]

        # TODO(synk): self(sentences=..., experiences=...) is abstract in the
        # reference; outputs_dict is built from pass-through streams only.
        outputs_dict = {
            "batch_size": batch_size,
            "sentences_widx": input_sentence,
            "exp_latents": input_streams_dict["exp_latents"],
            "exp_latents_values": input_streams_dict["exp_latents_values"],
            "exp_latents_one_hot_encoded":
                input_streams_dict["exp_latents_one_hot_encoded"],
        }

        if self.kwargs["with_weight_maxl1_loss"]:
            self.maxl1_loss_hook(losses_dict, input_streams_dict, outputs_dict)

        outputs_dict["losses"] = losses_dict
        return outputs_dict


# ----------------------------------------------------------------------------
if __name__ == "__main__":
    key = jax.random.PRNGKey(0)
    (k_exp, k_widx, k_lat, k_b0, k_b1, k_b2, k_c, k_d) = jax.random.split(key, 8)

    batch_size = 2
    obs_shape = (1, 1, 1, 16, 16)          # (nbr_exp, seq_len, C, H, W)
    vocab_size = 8
    max_sentence_length = 5

    agent = AgentPallas(obs_shape=obs_shape, vocab_size=vocab_size,
                        max_sentence_length=max_sentence_length,
                        role="speaker",
                        kwargs={"with_weight_maxl1_loss": True})

    experiences = jax.random.normal(k_exp, (batch_size,) + obs_shape,
                                    dtype=jnp.float32)
    sentences_widx = jax.random.randint(
        k_widx, (batch_size, max_sentence_length, 1), 0, vocab_size
    ).astype(jnp.float32)
    exp_latents = jax.random.normal(k_lat, (batch_size, 4), dtype=jnp.float32)

    input_streams_dict = {
        "sentences_widx": sentences_widx,
        "sentences_one_hot": None,
        "experiences": experiences,
        "exp_latents": exp_latents,
        "exp_latents_values": exp_latents,
        "exp_latents_one_hot_encoded": exp_latents,
        "it_rep": 0,
        "it_comm_round": 0,
        "losses_dict": {},
    }

    # 1) Toy agent parameters -> single-shot fast path (one grid step).
    outputs = agent.compute(input_streams_dict)
    maxl1 = jax.block_until_ready(outputs["maxl1_loss"])
    ref = sum(jnp.max(jnp.abs(p)) for p in agent.params)
    assert jnp.allclose(maxl1, ref, rtol=1e-5, atol=1e-6), (maxl1, ref)
    assert outputs["batch_size"] == batch_size

    # 2) Multi-tile / multi-split path: accumulator carried across grid steps,
    #    a parameter spanning both splits, padding rows, split combine.
    big_params = [
        jax.random.normal(k_b0, (1024, 1200), dtype=jnp.float32),
        jax.random.normal(k_b1, (97,), dtype=jnp.float32),
        jax.random.normal(k_b2, (33, 129), dtype=jnp.float32),
    ]
    slab, starts, lengths, n_params, tile_r, num_splits = pack_params(
        big_params, num_splits=2, max_tile_rows=1024, single_shot_bytes=0)
    got = jax.block_until_ready(maxl1_loss_pallas(
        slab, starts, lengths,
        n_params=n_params, tile_r=tile_r, num_splits=num_splits))
    want = sum(jnp.max(jnp.abs(p)) for p in big_params)
    assert jnp.allclose(got, want, rtol=1e-5, atol=1e-6), (got, want)

    # 3) bf16 slab: 16-row sublane minimum + native-dtype in-kernel math.
    kc0, kc1 = jax.random.split(k_c, 2)
    bf16_params = [
        jax.random.normal(kc0, (300, 700), dtype=jnp.float32).astype(jnp.bfloat16),
        jax.random.normal(kc1, (45,), dtype=jnp.float32).astype(jnp.bfloat16),
    ]
    slab, starts, lengths, n_params, tile_r, num_splits = pack_params(
        bf16_params, num_splits=1, max_tile_rows=512, single_shot_bytes=0)
    got = jax.block_until_ready(maxl1_loss_pallas(
        slab, starts, lengths,
        n_params=n_params, tile_r=tile_r, num_splits=num_splits))
    want = sum(jnp.max(jnp.abs(p.astype(jnp.float32))) for p in bf16_params)
    assert jnp.allclose(got, want, rtol=1e-5, atol=1e-6), (got, want)

    # 4) Many small parameters -> exercises the in-kernel fori_loop path and
    #    many segments sharing one tile.
    many_keys = jax.random.split(k_d, 12)
    many_params = [jax.random.normal(k, (i + 1, 50), dtype=jnp.float32)
                   for i, k in enumerate(many_keys)]
    slab, starts, lengths, n_params, tile_r, num_splits = pack_params(many_params)
    got = jax.block_until_ready(maxl1_loss_pallas(
        slab, starts, lengths,
        n_params=n_params, tile_r=tile_r, num_splits=num_splits))
    want = sum(jnp.max(jnp.abs(p)) for p in many_params)
    assert jnp.allclose(got, want, rtol=1e-5, atol=1e-6), (got, want)

    print("KERNEL_OK")
</pallas_src>

<mosaic_0001>
module attributes {stable_mosaic.version = 11 : i64} {
  func.func @_maxl1_kernel(%arg0: i32, %arg1: i32, %arg2: memref<4xi32, #tpu.memory_space<smem>>, %arg3: memref<4xi32, #tpu.memory_space<smem>>, %arg4: memref<16x128xf32, #tpu.memory_space<vmem>>, %arg5: memref<8x128xf32, #tpu.memory_space<vmem>>) attributes {dimension_semantics = [#tpu.dimension_semantics<parallel>, #tpu.dimension_semantics<arbitrary>], iteration_bounds = array<i64: 1, 1>, scalar_prefetch = 2 : i64, scratch_operands = 0 : i64, tpu.core_type = #tpu.core_type<tc>, window_params = [{transform_indices = @transform_0, window_bounds = array<i64: 16, 128>}, {transform_indices = @transform_1, window_bounds = array<i64: 8, 128>}]} {
    %c0_i32 = arith.constant 0 : i32
    %0 = arith.cmpi eq, %arg1, %c0_i32 : i32
    %1 = arith.extui %0 : i1 to i32
    %c0_i32_0 = arith.constant 0 : i32
    %2 = arith.cmpi ne, %1, %c0_i32_0 : i32
    scf.if %2 {
      %cst_17 = arith.constant 0.000000e+00 : f32
      %52 = vector.broadcast %cst_17 : f32 to vector<8x128xf32>
      %c0_18 = arith.constant 0 : index
      %c0_19 = arith.constant 0 : index
      %53 = vector.load %arg5[%c0_18, %c0_19] : memref<8x128xf32, #tpu.memory_space<vmem>>, vector<8x128xf32>
      tpu.vector_store %arg5[%c0_18, %c0_19], %52 {strides = array<i32>} : memref<8x128xf32, #tpu.memory_space<vmem>>, vector<8x128xf32>,
    } else {
    }
    %c1_i32 = arith.constant 1 : i32
    %3 = arith.muli %arg0, %c1_i32 : i32
    %4 = arith.addi %3, %arg1 : i32
    %c16_i32 = arith.constant 16 : i32
    %5 = arith.muli %4, %c16_i32 : i32
    %c0 = arith.constant 0 : index
    %c0_1 = arith.constant 0 : index
    %6 = vector.load %arg4[%c0, %c0_1] : memref<16x128xf32, #tpu.memory_space<vmem>>, vector<16x128xf32>
    %7 = math.absf %6 : vector<16x128xf32>
    %cst = arith.constant 0.000000e+00 : f32
    %8 = vector.broadcast %cst : f32 to vector<16x128xf32>
    %9 = tpu.iota {dimensions = array<i32: 0>} : vector<16x128xi32>
    %10 = vector.broadcast %5 : i32 to vector<16x128xi32>
    %11 = arith.addi %10, %9 : vector<16x128xi32>
    %12 = tpu.iota {dimensions = array<i32: 0>} : vector<8x128xi32>
    %c0_2 = arith.constant 0 : index
    %13 = memref.load %arg2[%c0_2] : memref<4xi32, #tpu.memory_space<smem>>
    %c0_3 = arith.constant 0 : index
    %14 = memref.load %arg3[%c0_3] : memref<4xi32, #tpu.memory_space<smem>>
    %c16_i32_4 = arith.constant 16 : i32
    %15 = arith.addi %5, %c16_i32_4 : i32
    %16 = arith.cmpi slt, %13, %15 : i32
    %17 = arith.addi %13, %14 : i32
    %18 = arith.cmpi sgt, %17, %5 : i32
    %19 = arith.andi %16, %18 : i1
    %20 = arith.extui %19 : i1 to i32
    %c0_i32_5 = arith.constant 0 : i32
    %21 = arith.cmpi ne, %20, %c0_i32_5 : i32
    scf.if %21 {
      %52 = vector.broadcast %13 : i32 to vector<16x128xi32>
      %53 = arith.subi %11, %52 : vector<16x128xi32>
      %54 = vector.broadcast %14 : i32 to vector<16x128xi32>
      %55 = arith.cmpi ult, %53, %54 : vector<16x128xi32>
      %56 = arith.select %55, %7, %8 : vector<16x128xi1>, vector<16x128xf32>
      %cst_17 = arith.constant dense<0xFF800000> : vector<128xf32>
      %57 = vector.multi_reduction <maximumf>, %56, %cst_17 [0] : vector<16x128xf32> to vector<128xf32>
      %58 = vector.shape_cast %57 : vector<128xf32> to vector<1x128xf32>
      %c0_18 = arith.constant 0 : index
      %c0_19 = arith.constant 0 : index
      %59 = vector.load %arg5[%c0_18, %c0_19] : memref<8x128xf32, #tpu.memory_space<vmem>>, vector<8x128xf32>
      %c0_i32_20 = arith.constant 0 : i32
      %60 = vector.broadcast %c0_i32_20 : i32 to vector<8x128xi32>
      %61 = arith.cmpi eq, %12, %60 : vector<8x128xi32>
      %62 = vector.broadcast %58 : vector<1x128xf32> to vector<8x128xf32>
      %63 = arith.maximumf %59, %62 : vector<8x128xf32>
      %64 = arith.select %61, %63, %59 : vector<8x128xi1>, vector<8x128xf32>
      %c0_21 = arith.constant 0 : index
      %c0_22 = arith.constant 0 : index
      %65 = vector.load %arg5[%c0_21, %c0_22] : memref<8x128xf32, #tpu.memory_space<vmem>>, vector<8x128xf32>
      tpu.vector_store %arg5[%c0_21, %c0_22], %64 {strides = array<i32>} : memref<8x128xf32, #tpu.memory_space<vmem>>, vector<8x128xf32>,
    } else {
    }
    %c1 = arith.constant 1 : index
    %22 = memref.load %arg2[%c1] : memref<4xi32, #tpu.memory_space<smem>>
    %c1_6 = arith.constant 1 : index
    %23 = memref.load %arg3[%c1_6] : memref<4xi32, #tpu.memory_space<smem>>
    %c16_i32_7 = arith.constant 16 : i32
    %24 = arith.addi %5, %c16_i32_7 : i32
    %25 = arith.cmpi slt, %22, %24 : i32
    %26 = arith.addi %22, %23 : i32
    %27 = arith.cmpi sgt, %26, %5 : i32
    %28 = arith.andi %25, %27 : i1
    %29 = arith.extui %28 : i1 to i32
    %c0_i32_8 = arith.constant 0 : i32
    %30 = arith.cmpi ne, %29, %c0_i32_8 : i32
    scf.if %30 {
      %52 = vector.broadcast %22 : i32 to vector<16x128xi32>
      %53 = arith.subi %11, %52 : vector<16x128xi32>
      %54 = vector.broadcast %23 : i32 to vector<16x128xi32>
      %55 = arith.cmpi ult, %53, %54 : vector<16x128xi32>
      %56 = arith.select %55, %7, %8 : vector<16x128xi1>, vector<16x128xf32>
      %cst_17 = arith.constant dense<0xFF800000> : vector<128xf32>
      %57 = vector.multi_reduction <maximumf>, %56, %cst_17 [0] : vector<16x128xf32> to vector<128xf32>
      %58 = vector.shape_cast %57 : vector<128xf32> to vector<1x128xf32>
      %c0_18 = arith.constant 0 : index
      %c0_19 = arith.constant 0 : index
      %59 = vector.load %arg5[%c0_18, %c0_19] : memref<8x128xf32, #tpu.memory_space<vmem>>, vector<8x128xf32>
      %c1_i32_20 = arith.constant 1 : i32
      %60 = vector.broadcast %c1_i32_20 : i32 to vector<8x128xi32>
      %61 = arith.cmpi eq, %12, %60 : vector<8x128xi32>
      %62 = vector.broadcast %58 : vector<1x128xf32> to vector<8x128xf32>
      %63 = arith.maximumf %59, %62 : vector<8x128xf32>
      %64 = arith.select %61, %63, %59 : vector<8x128xi1>, vector<8x128xf32>
      %c0_21 = arith.constant 0 : index
      %c0_22 = arith.constant 0 : index
      %65 = vector.load %arg5[%c0_21, %c0_22] : memref<8x128xf32, #tpu.memory_space<vmem>>, vector<8x128xf32>
      tpu.vector_store %arg5[%c0_21, %c0_22], %64 {strides = array<i32>} : memref<8x128xf32, #tpu.memory_space<vmem>>, vector<8x128xf32>,
    } else {
    }
    %c2 = arith.constant 2 : index
    %31 = memref.load %arg2[%c2] : memref<4xi32, #tpu.memory_space<smem>>
    %c2_9 = arith.constant 2 : index
    %32 = memref.load %arg3[%c2_9] : memref<4xi32, #tpu.memory_space<smem>>
    %c16_i32_10 = arith.constant 16 : i32
    %33 = arith.addi %5, %c16_i32_10 : i32
    %34 = arith.cmpi slt, %31, %33 : i32
    %35 = arith.addi %31, %32 : i32
    %36 = arith.cmpi sgt, %35, %5 : i32
    %37 = arith.andi %34, %36 : i1
    %38 = arith.extui %37 : i1 to i32
    %c0_i32_11 = arith.constant 0 : i32
    %39 = arith.cmpi ne, %38, %c0_i32_11 : i32
    scf.if %39 {
      %52 = vector.broadcast %31 : i32 to vector<16x128xi32>
      %53 = arith.subi %11, %52 : vector<16x128xi32>
      %54 = vector.broadcast %32 : i32 to vector<16x128xi32>
      %55 = arith.cmpi ult, %53, %54 : vector<16x128xi32>
      %56 = arith.select %55, %7, %8 : vector<16x128xi1>, vector<16x128xf32>
      %cst_17 = arith.constant dense<0xFF800000> : vector<128xf32>
      %57 = vector.multi_reduction <maximumf>, %56, %cst_17 [0] : vector<16x128xf32> to vector<128xf32>
      %58 = vector.shape_cast %57 : vector<128xf32> to vector<1x128xf32>
      %c0_18 = arith.constant 0 : index
      %c0_19 = arith.constant 0 : index
      %59 = vector.load %arg5[%c0_18, %c0_19] : memref<8x128xf32, #tpu.memory_space<vmem>>, vector<8x128xf32>
      %c2_i32 = arith.constant 2 : i32
      %60 = vector.broadcast %c2_i32 : i32 to vector<8x128xi32>
      %61 = arith.cmpi eq, %12, %60 : vector<8x128xi32>
      %62 = vector.broadcast %58 : vector<1x128xf32> to vector<8x128xf32>
      %63 = arith.maximumf %59, %62 : vector<8x128xf32>
      %64 = arith.select %61, %63, %59 : vector<8x128xi1>, vector<8x128xf32>
      %c0_20 = arith.constant 0 : index
      %c0_21 = arith.constant 0 : index
      %65 = vector.load %arg5[%c0_20, %c0_21] : memref<8x128xf32, #tpu.memory_space<vmem>>, vector<8x128xf32>
      tpu.vector_store %arg5[%c0_20, %c0_21], %64 {strides = array<i32>} : memref<8x128xf32, #tpu.memory_space<vmem>>, vector<8x128xf32>,
    } else {
    }
    %c3 = arith.constant 3 : index
    %40 = memref.load %arg2[%c3] : memref<4xi32, #tpu.memory_space<smem>>
    %c3_12 = arith.constant 3 : index
    %41 = memref.load %arg3[%c3_12] : memref<4xi32, #tpu.memory_space<smem>>
    %c16_i32_13 = arith.constant 16 : i32
    %42 = arith.addi %5, %c16_i32_13 : i32
    %43 = arith.cmpi slt, %40, %42 : i32
    %44 = arith.addi %40, %41 : i32
    %45 = arith.cmpi sgt, %44, %5 : i32
    %46 = arith.andi %43, %45 : i1
    %47 = arith.extui %46 : i1 to i32
    %c0_i32_14 = arith.constant 0 : i32
    %48 = arith.cmpi ne, %47, %c0_i32_14 : i32
    scf.if %48 {
      %52 = vector.broadcast %40 : i32 to vector<16x128xi32>
      %53 = arith.subi %11, %52 : vector<16x128xi32>
      %54 = vector.broadcast %41 : i32 to vector<16x128xi32>
      %55 = arith.cmpi ult, %53, %54 : vector<16x128xi32>
      %56 = arith.select %55, %7, %8 : vector<16x128xi1>, vector<16x128xf32>
      %cst_17 = arith.constant dense<0xFF800000> : vector<128xf32>
      %57 = vector.multi_reduction <maximumf>, %56, %cst_17 [0] : vector<16x128xf32> to vector<128xf32>
      %58 = vector.shape_cast %57 : vector<128xf32> to vector<1x128xf32>
      %c0_18 = arith.constant 0 : index
      %c0_19 = arith.constant 0 : index
      %59 = vector.load %arg5[%c0_18, %c0_19] : memref<8x128xf32, #tpu.memory_space<vmem>>, vector<8x128xf32>
      %c3_i32 = arith.constant 3 : i32
      %60 = vector.broadcast %c3_i32 : i32 to vector<8x128xi32>
      %61 = arith.cmpi eq, %12, %60 : vector<8x128xi32>
      %62 = vector.broadcast %58 : vector<1x128xf32> to vector<8x128xf32>
      %63 = arith.maximumf %59, %62 : vector<8x128xf32>
      %64 = arith.select %61, %63, %59 : vector<8x128xi1>, vector<8x128xf32>
      %c0_20 = arith.constant 0 : index
      %c0_21 = arith.constant 0 : index
      %65 = vector.load %arg5[%c0_20, %c0_21] : memref<8x128xf32, #tpu.memory_space<vmem>>, vector<8x128xf32>
      tpu.vector_store %arg5[%c0_20, %c0_21], %64 {strides = array<i32>} : memref<8x128xf32, #tpu.memory_space<vmem>>, vector<8x128xf32>,
    } else {
    }
    %c0_i32_15 = arith.constant 0 : i32
    %49 = arith.cmpi eq, %arg1, %c0_i32_15 : i32
    %50 = arith.extui %49 : i1 to i32
    %c0_i32_16 = arith.constant 0 : i32
    %51 = arith.cmpi ne, %50, %c0_i32_16 : i32
    scf.if %51 {
      %c0_17 = arith.constant 0 : index
      %c0_18 = arith.constant 0 : index
      %52 = vector.load %arg5[%c0_17, %c0_18] : memref<8x128xf32, #tpu.memory_space<vmem>>, vector<8x128xf32>
      %cst_19 = arith.constant dense<0xFF800000> : vector<8xf32>
      %53 = vector.multi_reduction <maximumf>, %52, %cst_19 [1] : vector<8x128xf32> to vector<8xf32>
      %54 = vector.shape_cast %53 : vector<8xf32> to vector<8x1xf32>
      %55 = vector.shape_cast %54 : vector<8x1xf32> to vector<8x1xf32>
      %56 = vector.broadcast %55 : vector<8x1xf32> to vector<8x128xf32>
      %c0_20 = arith.constant 0 : index
      %c0_21 = arith.constant 0 : index
      %57 = vector.load %arg5[%c0_20, %c0_21] : memref<8x128xf32, #tpu.memory_space<vmem>>, vector<8x128xf32>
      tpu.vector_store %arg5[%c0_20, %c0_21], %56 {strides = array<i32>} : memref<8x128xf32, #tpu.memory_space<vmem>>, vector<8x128xf32>,
    } else {
    }
    return
  }
  func.func @transform_0(%arg0: i32, %arg1: i32, %arg2: memref<4xi32, #tpu.memory_space<smem>>, %arg3: memref<4xi32, #tpu.memory_space<smem>>) -> (i32, i32) {
    %c1_i32 = arith.constant 1 : i32
    %0 = arith.muli %arg0, %c1_i32 : i32
    %1 = arith.addi %0, %arg1 : i32
    %c0_i32 = arith.constant 0 : i32
    %c0_i32_0 = arith.constant 0 : i32
    return %1, %c0_i32 : i32, i32
  }
  func.func @transform_1(%arg0: i32, %arg1: i32, %arg2: memref<4xi32, #tpu.memory_space<smem>>, %arg3: memref<4xi32, #tpu.memory_space<smem>>) -> (i32, i32) {
    %c0_i32 = arith.constant 0 : i32
    %c0_i32_0 = arith.constant 0 : i32
    return %arg0, %c0_i32 : i32, i32
  }
}

</mosaic_0001>

<bundles_post_ra>
// kernel: maxl1_loss_pallas.1
= control target key start
LH: loop header
LB: loop body
LE: loop exit
PB: predicated region body
PF: predicated region fallthrough
CT: control target
= control target key end

     0   :  { %s354_s0 = inlined_call_operand.vmem [shape: s32[4], index: 0, kind: input, shape index: {}]   ;;  %s355_s2 = inlined_call_operand.hbm [shape: f32[16,128], index: 2, kind: input, shape index: {}]   ;;  %s356_s3 = inlined_call_operand.vmem [shape: f32[8,128], index: 3, kind: output, shape index: {}]   ;;  %s357_s1 = inlined_call_operand.vmem [shape: s32[4], index: 1, kind: input, shape index: {}]  }
   0x1   :  { %s8_s14 = sshll.u32 %s354_s0, 4  ;;  %s12_s17 = sshll.u32 %s357_s1, 4  ;;  %s9_s14 = int_to_ptr.vmem [resolvable:$true] %s8_s14  ;;  %s13_s17 = int_to_ptr.vmem [resolvable:$true] %s12_s17 }
   0x2   :  { %s198_s18 = scalar_lea.vmem %s9_s14, 16  ;;  %p203_p1 = scmp.lt.s32.totalorder %s9_s14, %s9_s14 }
   0x3   :  { %p199_p0 = scmp.ne.s32.totalorder %s9_s14, %s198_s18  ;;  %p204_p2 = scmp.lt.s32.totalorder %s198_s18, %s198_s18 }
   0x5   :  { %p205_p3 = por %p204_p2, %p203_p1 }
   0x7   :  { %p206_p4 = pnand %p205_p3, %p199_p0 }
   0x9   :  { %209 = shalt.err (!%p206_p4)  }
   0xa   :  { %s248_s19 = smov [#allocation3]   ;;  %s210_s20 = scalar_lea.vmem %s13_s17, 16 }
   0xb   :  { %11 = dma.vmem_to_smem %s9_s14, 16, %s248_s19, [#allocation2] }
   0xc   :  { %p211_p5 = scmp.ne.s32.totalorder %s13_s17, %s210_s20  ;;  %p215_p6 = scmp.lt.s32.totalorder %s13_s17, %s13_s17 }
   0xd   :  { %p216_p7 = scmp.lt.s32.totalorder %s210_s20, %s210_s20 }
   0xf   :  { %p217_p8 = por %p216_p7, %p215_p6 }
  0x11   :  { %p218_p9 = pnand %p217_p8, %p211_p5 }
  0x13   :  { %221 = shalt.err (!%p218_p9)  }
  0x14   :  { %s249_s0 = smov [#allocation4]  }
  0x15   :  { %15 = dma.vmem_to_smem %s13_s17, 16, %s249_s0, [#allocation2] }
  0x16   :  { %244 = dma.done.wait [#allocation2], 32 }
  0x17   :  { %245 = vsyncadd [#allocation2], 4294967264 }
  0x18   :  { %17 = sfence }
  0x19   :  { %18 = vsyncpa [#allocation6], 0  ;;  %s250_s1 = smov [#allocation5]   ;;  %s222_s24 = scalar_lea.hbm %s355_s2, 256 }
  0x1a   :  { %s28_s21 = sshll.u32 %s250_s1, 4  ;;  %p223_p10 = scmp.ne.s32.totalorder %s355_s2, %s222_s24  ;;  %s29_s21 = int_to_ptr.vmem [resolvable:$true] %s28_s21 }
  0x1b   :  { %p226_p11 = scmp.lt.u32.totalorder %s222_s24, %s355_s2 }
  0x1d   :  { %p228_p12 = pnand %p226_p11, %p223_p10 }
  0x1f   :  { %231 = shalt.err (!%p228_p12)
}
  0x20   :  { %s232_s29 = scalar_lea.vmem %s29_s21, 256  ;;  %p237_p0 = scmp.lt.s32.totalorder %s29_s21, %s29_s21 }
  0x21   :  { %p233_p13 = scmp.ne.s32.totalorder %s29_s21, %s232_s29  ;;  %p238_p1 = scmp.lt.s32.totalorder %s232_s29, %s232_s29 }
  0x23   :  { %p239_p2 = por %p238_p1, %p237_p0 }
  0x25   :  { %p240_p3 = pnand %p239_p2, %p233_p13 }
  0x27   :  { %243 = shalt.err (!%p240_p3)
}
  0x28   :  { %s251_s30 = smov 128   ;;  %s252_s4 = smov 8  }
  0x29   :  { %34 = dma.hbm_to_vmem [thread:$0]  %s355_s2, 256, %s29_s21, [#allocation6], %s251_s30, %s251_s30, %s252_s4  }
  0x2a   :  { %246 = dma.done.wait [#allocation6], 256  }
  0x2b   :  { %247 = vsyncadd [#allocation6], 4294967040  ;;  %v51_v0 = vlaneseq  ;;  %s57_s7 = sld [smem:[#allocation3]]  ;;  %v253_v1 = vmov 0.0   ;;  %v47_v4 = vld [vmem:[#allocation5] sm:$0xff]  ;;  %v48_v5 = vld [vmem:[#allocation5 + $0x8] sm:$0xff] }
  0x2c   :  { %s58_s8 = sld [smem:[#allocation4]]  ;;  %44 = vst [vmem:[%s356_s3] sm:$0xff] %v253_v1  ;;  %v300_v6 = vand.u32 2147483647, %v47_v4  ;;  %v302_v7 = vand.u32 2147483647, %v48_v5 }
  0x2d   :  { %v295_v2 = vshrl.u32 %v51_v0, 7 }
  0x2f   :  { %v298_v3 = vadd.s32 8, %v295_v2 }
  0x31   :  { %p60_p4 = scmp.lt.s32.totalorder %s57_s7, 16 }
  0x32   :  { %s61_s11 = sadd.s32 %s58_s8, %s57_s7 }
  0x33   :  { %p62_p5 = scmp.gt.s32.totalorder %s61_s11, 0 }
  0x35   :  { %p63_p6 = pnand %p62_p5, %p60_p4 }
  0x36   :  { %v67_v8 = vstv (!%p63_p6), %s57_s7  ;;  %v70_v9 = vstv (!%p63_p6), %s58_s8  ;;  %v82_v20 = vld [vmem:[%s356_s3] sm:$0xff] (!%p63_p6)  ;;  %vm83_vm2 = vcmp.eq.s32.totalorder (!%p63_p6), %v295_v2, 0 }
  0x37   :  { %66 = sbr.rel (%p63_p6) target bundleno = 77 (0x4d), region = 17  ;;  %v68_v10 = vsub.s32 (!%p63_p6), %v295_v2, %v67_v8  ;;  %v69_v11 = vsub.s32 (!%p63_p6), %v298_v3, %v67_v8 }
  0x39   :  { %vm71_vm0 = vcmp.lt.u32.totalorder (!%p63_p6), %v68_v10, %v70_v9  ;;  %vm72_vm1 = vcmp.lt.u32.totalorder (!%p63_p6), %v69_v11, %v70_v9 }
  0x3a   :  { %v73_v12 = vsel (!%p63_p6), %vm71_vm0, %v300_v6, 0.0  ;;  %v74_v13 = vsel (!%p63_p6), %vm72_vm1, %v302_v7, 0.0 }
  0x3b   :  { %v75_v14 = vmax.f32 (!%p63_p6), %v73_v12, %v74_v13 }
  0x3d   :  { %v76_v15 = vrot.slane (!%p63_p6), %v75_v14, 4 }
  0x3f   :  { %v77_v16 = vmax.f32 %v75_v14, %v76_v15 }
  0x41   :  { %v78_v17 = vrot.slane %v77_v16, 2 }
  0x43   :  { %v79_v18 = vmax.f32 %v77_v16, %v78_v17 }
  0x45   :  { %v80_v19 = vrot.slane %v79_v18, 1 }
  0x47   :  { %v81_v21 = vmax.f32 %v79_v18, %v80_v19 }
  0x49   :  { %v84_v22 = vmax.f32 %v82_v20, %v81_v21 }
  0x4b   :  { %v85_v23 = vsel %vm83_vm2, %v84_v22, %v82_v20 }
  0x4c   :  { %86 = vst [vmem:[%s356_s3] sm:$0xff] %v85_v23 }
  0x4d PF:  { %s186_s15 = sld [smem:[#allocation3 + $0x1]] }
  0x4e   :  { %s187_s16 = sld [smem:[#allocation4 + $0x1]] }
  0x53   :  { %p89_p7 = scmp.lt.s32.totalorder %s186_s15, 16 }
  0x54   :  { %s90_s17 = sadd.s32 %s187_s16, %s186_s15 }
  0x55   :  { %p91_p8 = scmp.gt.s32.totalorder %s90_s17, 0 }
  0x57   :  { %p92_p9 = pnand %p91_p8, %p89_p7 }
  0x58   :  { %v96_v24 = vstv (!%p92_p9), %s186_s15  ;;  %v99_v25 = vstv (!%p92_p9), %s187_s16  ;;  %v111_v36 = vld [vmem:[%s356_s3] sm:$0xff] (!%p92_p9)  ;;  %vm112_vm5 = vcmp.eq.s32.totalorder (!%p92_p9), %v295_v2, 1 }
  0x59   :  { %95 = sbr.rel (%p92_p9) target bundleno = 111 (0x6f), region = 21  ;;  %v97_v26 = vsub.s32 (!%p92_p9), %v295_v2, %v96_v24  ;;  %v98_v27 = vsub.s32 (!%p92_p9), %v298_v3, %v96_v24 }
  0x5b   :  { %vm100_vm3 = vcmp.lt.u32.totalorder (!%p92_p9), %v97_v26, %v99_v25  ;;  %vm101_vm4 = vcmp.lt.u32.totalorder (!%p92_p9), %v98_v27, %v99_v25 }
  0x5c   :  { %v102_v28 = vsel (!%p92_p9), %vm100_vm3, %v300_v6, 0.0  ;;  %v103_v29 = vsel (!%p92_p9), %vm101_vm4, %v302_v7, 0.0 }
  0x5d   :  { %v104_v30 = vmax.f32 (!%p92_p9), %v102_v28, %v103_v29 }
  0x5f   :  { %v105_v31 = vrot.slane (!%p92_p9), %v104_v30, 4 }
  0x61   :  { %v106_v32 = vmax.f32 %v104_v30, %v105_v31 }
  0x63   :  { %v107_v33 = vrot.slane %v106_v32, 2 }
  0x65   :  { %v108_v34 = vmax.f32 %v106_v32, %v107_v33 }
  0x67   :  { %v109_v35 = vrot.slane %v108_v34, 1 }
  0x69   :  { %v110_v37 = vmax.f32 %v108_v34, %v109_v35 }
  0x6b   :  { %v113_v38 = vmax.f32 %v111_v36, %v110_v37 }
  0x6d   :  { %v114_v39 = vsel %vm112_vm5, %v113_v38, %v111_v36 }
  0x6e   :  { %115 = vst [vmem:[%s356_s3] sm:$0xff] %v114_v39 }
  0x6f PF:  { %s188_s1 = sld [smem:[#allocation3 + $0x2]] }
  0x70   :  { %s189_s21 = sld [smem:[#allocation4 + $0x2]] }
  0x75   :  { %p118_p10 = scmp.lt.s32.totalorder %s188_s1, 16 }
  0x76   :  { %s119_s22 = sadd.s32 %s189_s21, %s188_s1 }
  0x77   :  { %p120_p11 = scmp.gt.s32.totalorder %s119_s22, 0 }
  0x79   :  { %p121_p12 = pnand %p120_p11, %p118_p10 }
  0x7a   :  { %v125_v40 = vstv (!%p121_p12), %s188_s1  ;;  %v128_v41 = vstv (!%p121_p12), %s189_s21  ;;  %v140_v52 = vld [vmem:[%s356_s3] sm:$0xff] (!%p121_p12)  ;;  %vm141_vm8 = vcmp.eq.s32.totalorder (!%p121_p12), %v295_v2, 2 }
  0x7b   :  { %124 = sbr.rel (%p121_p12) target bundleno = 145 (0x91), region = 25  ;;  %v126_v42 = vsub.s32 (!%p121_p12), %v295_v2, %v125_v40  ;;  %v127_v43 = vsub.s32 (!%p121_p12), %v298_v3, %v125_v40 }
  0x7d   :  { %vm129_vm6 = vcmp.lt.u32.totalorder (!%p121_p12), %v126_v42, %v128_v41  ;;  %vm130_vm7 = vcmp.lt.u32.totalorder (!%p121_p12), %v127_v43, %v128_v41 }
  0x7e   :  { %v131_v44 = vsel (!%p121_p12), %vm129_vm6, %v300_v6, 0.0  ;;  %v132_v45 = vsel (!%p121_p12), %vm130_vm7, %v302_v7, 0.0 }
  0x7f   :  { %v133_v46 = vmax.f32 (!%p121_p12), %v131_v44, %v132_v45 }
  0x81   :  { %v134_v47 = vrot.slane (!%p121_p12), %v133_v46, 4 }
  0x83   :  { %v135_v48 = vmax.f32 %v133_v46, %v134_v47 }
  0x85   :  { %v136_v49 = vrot.slane %v135_v48, 2 }
  0x87   :  { %v137_v50 = vmax.f32 %v135_v48, %v136_v49 }
  0x89   :  { %v138_v51 = vrot.slane %v137_v50, 1 }
  0x8b   :  { %v139_v53 = vmax.f32 %v137_v50, %v138_v51 }
  0x8d   :  { %v142_v54 = vmax.f32 %v140_v52, %v139_v53 }
  0x8f   :  { %v143_v55 = vsel %vm141_vm8, %v142_v54, %v140_v52 }
  0x90   :  { %144 = vst [vmem:[%s356_s3] sm:$0xff] %v143_v55 }
  0x91 PF:  { %s190_s27 = sld [smem:[#allocation3 + $0x3]] }
  0x92   :  { %s191_s28 = sld [smem:[#allocation4 + $0x3]] }
  0x97   :  { %p147_p13 = scmp.lt.s32.totalorder %s190_s27, 16 }
  0x98   :  { %s148_s29 = sadd.s32 %s191_s28, %s190_s27 }
  0x99   :  { %p149_p0 = scmp.gt.s32.totalorder %s148_s29, 0 }
  0x9b   :  { %p150_p1 = pnand %p149_p0, %p147_p13 }
  0x9c   :  { %v154_v56 = vstv (!%p150_p1), %s190_s27  ;;  %v157_v57 = vstv (!%p150_p1), %s191_s28  ;;  %v169_v8 = vld [vmem:[%s356_s3] sm:$0xff] (!%p150_p1)  ;;  %vm170_vm11 = vcmp.eq.s32.totalorder (!%p150_p1), %v295_v2, 3 }
  0x9d   :  { %153 = sbr.rel (%p150_p1) target bundleno = 179 (0xb3), region = 29  ;;  %v155_v58 = vsub.s32 (!%p150_p1), %v295_v2, %v154_v56  ;;  %v156_v59 = vsub.s32 (!%p150_p1), %v298_v3, %v154_v56 }
  0x9f   :  { %vm158_vm9 = vcmp.lt.u32.totalorder (!%p150_p1), %v155_v58, %v157_v57  ;;  %vm159_vm10 = vcmp.lt.u32.totalorder (!%p150_p1), %v156_v59, %v157_v57 }
  0xa0   :  { %v160_v60 = vsel (!%p150_p1), %vm158_vm9, %v300_v6, 0.0  ;;  %v161_v61 = vsel (!%p150_p1), %vm159_vm10, %v302_v7, 0.0 }
  0xa1   :  { %v162_v62 = vmax.f32 (!%p150_p1), %v160_v60, %v161_v61 }
  0xa3   :  { %v163_v63 = vrot.slane (!%p150_p1), %v162_v62, 4 }
  0xa5   :  { %v164_v0 = vmax.f32 %v162_v62, %v163_v63 }
  0xa7   :  { %v165_v1 = vrot.slane %v164_v0, 2 }
  0xa9   :  { %v166_v4 = vmax.f32 %v164_v0, %v165_v1 }
  0xab   :  { %v167_v5 = vrot.slane %v166_v4, 1 }
  0xad   :  { %v168_v9 = vmax.f32 %v166_v4, %v167_v5 }
  0xaf   :  { %v171_v3 = vmax.f32 %v169_v8, %v168_v9 }
  0xb1   :  { %v172_v10 = vsel %vm170_vm11, %v171_v3, %v169_v8 }
  0xb2   :  { %173 = vst [vmem:[%s356_s3] sm:$0xff] %v172_v10 }
  0xb3 PF:  {}
  0xb9   :  { %v177_v6 = vld [vmem:[%s356_s3] sm:$0xff] }
  0xba   :  { %178 = vmax.xlane.f32.xlu0 %v177_v6 }
 0x147   :  { %v179_v7 = vpop.xlane.xlu0 %178 }
 0x148   :  { %180 = vst [vmem:[%s356_s3] sm:$0xff] %v179_v7 }
 0x149   :  { %185 = vsyncpa [#allocation6], 1 }

</bundles_post_ra>
